<compile_context>
chip_gen: v7x
topology: tpu7x:2x2x1
jax: 0.10.0
libtpu: 0.0.40
codegen_flags: <defaults>
</compile_context>

<pallas_src>
import math
import functools

import jax
import jax.numpy as jnp
from jax.experimental import pallas as pl
from jax.experimental.pallas import tpu as pltpu


_RESIDENT_VMEM_BUDGET = 32 * 1024 * 1024   # bytes resident in VMEM (incl. double buffers)
_VMEM_LIMIT_BYTES = 48 * 1024 * 1024       # <= v7x 64 MiB physical, plenty on v5e/v6e


def _pos_enc_kernel(pos_ref, feat_ref, const_ref, out_ref, *, k):
    # pos_ref  : (T, k)    float32 — position index for each of the k folded sub-rows
    # feat_ref : (T, W)    feat dtype, W = k * d_model (lane-dense)
    # const_ref: (k+1, W)  float32 — rows 0..k-1: div_term masked to group g's lanes,
    #                                row  k     : phase (0 / pi/2 alternating)
    # out_ref  : (T, W)    feat dtype
    cr = const_ref[...]                              # (k+1, W), tiny, loaded once per tile
    angle = cr[k:k + 1, :]                           # phase row, (1, W)
    for g in range(k):                               # k masked-div FMAs (VALU); k <= 64
        angle = angle + pos_ref[:, g:g + 1] * cr[g:g + 1, :]
    # Single transcendental: even cols sin(pos*div), odd cols sin(pos*div + pi/2) = cos.
    out_ref[...] = (feat_ref[...].astype(jnp.float32) + jnp.sin(angle)).astype(out_ref.dtype)


def _choose_fold(rows, d_model):
    """Largest k with k*d_model lane-dense (k | 128/d_model) and k | rows."""
    if d_model % 128 == 0:
        return 1
    if d_model < 128 and 128 % d_model == 0:
        kmax = 128 // d_model
        for cand in range(kmax, 0, -1):
            if kmax % cand == 0 and rows % cand == 0:
                return cand
    return 1


@jax.jit
def positional_encoding(feat, bins):
    """feat: [B, S, D] float, bins: [B, S] integer position indices. Eval-mode forward."""
    B, S, D = feat.shape
    assert D % 2 == 0, "d_model must be even (same implicit assumption as the PyTorch module)"
    rows = B * S

    # --- lane folding: fold k consecutive rows into lanes so W = k*D is 128-dense ---
    k = _choose_fold(rows, D)
    W = k * D
    R0 = rows // k

    # --- tile sizing from a VMEM budget (dtype-aware sublane alignment) ---
    isz = jnp.dtype(feat.dtype).itemsize
    sub = {4: 8, 2: 16, 1: 32}.get(isz, 8)
    # per folded row: feat-in + out double-buffered, + lane-padded (128) position block x2
    bytes_per_row = 2 * 2 * W * isz + 2 * 128 * 4
    row_budget = max(sub, (_RESIDENT_VMEM_BUDGET // bytes_per_row) // sub * sub)
    if R0 <= row_budget:
        row_tile = R0                              # single block == full array dims
    else:
        quarter = ((-(-R0 // 4)) + sub - 1) // sub * sub   # aim for >= 4 grid steps
        row_tile = max(sub, min(row_budget, quarter))
    grid = (pl.cdiv(R0, row_tile),)                # partial last block masked by Pallas

    feat_f = feat.reshape(R0, W)                   # free: contiguous row-major view
    pos_f = bins.reshape(R0, k).astype(jnp.float32)

    # Sinusoidal constants (constant-folded at compile time).
    half = jnp.arange(0, D, 2, dtype=jnp.float32)
    div_term = jnp.exp(half * (-math.log(10000.0) / D))                     # (D//2,)
    div_full = jnp.repeat(div_term, 2)                                      # (D,)
    phase_full = jnp.tile(jnp.array([0.0, math.pi / 2.0], jnp.float32), D // 2)
    div_masked = (jnp.eye(k, dtype=jnp.float32)[:, :, None]
                  * div_full[None, None, :]).reshape(k, W)                  # (k, W)
    const = jnp.concatenate([div_masked, jnp.tile(phase_full, k)[None, :]], axis=0)  # (k+1, W)

    kernel = functools.partial(_pos_enc_kernel, k=k)
    out_f = pl.pallas_call(
        kernel,
        out_shape=jax.ShapeDtypeStruct((R0, W), feat.dtype),
        grid=grid,
        in_specs=[
            pl.BlockSpec((row_tile, k), lambda i: (i, 0)),     # positions
            pl.BlockSpec((row_tile, W), lambda i: (i, 0)),     # features
            pl.BlockSpec((k + 1, W), lambda i: (0, 0)),        # div/phase constants
        ],
        out_specs=pl.BlockSpec((row_tile, W), lambda i: (i, 0)),
        compiler_params=pltpu.CompilerParams(
            dimension_semantics=("parallel",),
            vmem_limit_bytes=_VMEM_LIMIT_BYTES,
        ),
    )(pos_f, feat_f, const)

    return out_f.reshape(B, S, D)


def reference(feat, bins, d_model, max_len=64):
    """Pure-JAX reference mirroring the PyTorch buffer construction (eval-mode)."""
    position = jnp.arange(max_len, dtype=jnp.float32)[:, None]              # (L, 1)
    div_term = jnp.exp(jnp.arange(0, d_model, 2, dtype=jnp.float32)
                       * (-math.log(10000.0) / d_model))                    # (D/2,)
    pe = jnp.zeros((max_len, d_model), jnp.float32)
    pe = pe.at[:, 0::2].set(jnp.sin(position * div_term))
    pe = pe.at[:, 1::2].set(jnp.cos(position * div_term))
    return feat + pe[bins]                                                  # eval-mode dropout = id


if __name__ == "__main__":
    max_len = 64

    # Case 1: D = 32 exercises the lane-folded (k = 4) path.
    key = jax.random.PRNGKey(0)
    kf, kb = jax.random.split(key)
    B, S, D = 2, 8, 32
    feat = jax.random.normal(kf, (B, S, D), dtype=jnp.float32)
    bins = jax.random.randint(kb, (B, S), 0, max_len, dtype=jnp.int32)
    out = jax.block_until_ready(positional_encoding(feat, bins))
    ref = reference(feat, bins, D, max_len)
    assert out.shape == (B, S, D)
    assert jnp.allclose(out, ref, atol=1e-4, rtol=1e-5), "mismatch vs reference (D=32)"

    # Case 2: D = 128 exercises the unfolded (k = 1) path.
    kf2, kb2 = jax.random.split(jax.random.PRNGKey(1))
    B2, S2, D2 = 2, 8, 128
    feat2 = jax.random.normal(kf2, (B2, S2, D2), dtype=jnp.float32)
    bins2 = jax.random.randint(kb2, (B2, S2), 0, max_len, dtype=jnp.int32)
    out2 = jax.block_until_ready(positional_encoding(feat2, bins2))
    ref2 = reference(feat2, bins2, D2, max_len)
    assert jnp.allclose(out2, ref2, atol=1e-4, rtol=1e-5), "mismatch vs reference (D=128)"

    print("KERNEL_OK")
</pallas_src>

<mosaic_0001>
module attributes {stable_mosaic.version = 11 : i64} {
  func.func @_pos_enc_kernel(%arg0: i32, %arg1: memref<4x4xf32, #tpu.memory_space<vmem>>, %arg2: memref<4x128xf32, #tpu.memory_space<vmem>>, %arg3: memref<5x128xf32, #tpu.memory_space<vmem>>, %arg4: memref<4x128xf32, #tpu.memory_space<vmem>>) attributes {dimension_semantics = [#tpu.dimension_semantics<parallel>], iteration_bounds = array<i64: 1>, scalar_prefetch = 0 : i64, scratch_operands = 0 : i64, tpu.core_type = #tpu.core_type<tc>, window_params = [{transform_indices = @transform_0, window_bounds = array<i64: 4, 4>}, {transform_indices = @transform_1, window_bounds = array<i64: 4, 128>}, {pipeline_mode = #tpu.pipeline_mode<synchronous>, transform_indices = @transform_2, window_bounds = array<i64: 5, 128>}, {transform_indices = @transform_3, window_bounds = array<i64: 4, 128>}]} {
    %c0 = arith.constant 0 : index
    %c0_0 = arith.constant 0 : index
    %0 = vector.load %arg3[%c0, %c0_0] : memref<5x128xf32, #tpu.memory_space<vmem>>, vector<5x128xf32>
    %1 = vector.extract_strided_slice %0 {offsets = [4, 0], sizes = [1, 128], strides = [1, 1]} : vector<5x128xf32> to vector<1x128xf32>
    %c0_1 = arith.constant 0 : index
    %c0_2 = arith.constant 0 : index
    %2 = vector.load %arg1[%c0_1, %c0_2] : memref<4x4xf32, #tpu.memory_space<vmem>>, vector<4x1xf32>
    %3 = vector.extract_strided_slice %0 {offsets = [0, 0], sizes = [1, 128], strides = [1, 1]} : vector<5x128xf32> to vector<1x128xf32>
    %4 = vector.broadcast %2 : vector<4x1xf32> to vector<4x128xf32>
    %5 = vector.broadcast %3 : vector<1x128xf32> to vector<4x128xf32>
    %6 = arith.mulf %4, %5 : vector<4x128xf32>
    %7 = vector.broadcast %1 : vector<1x128xf32> to vector<4x128xf32>
    %8 = arith.addf %7, %6 : vector<4x128xf32>
    %c0_3 = arith.constant 0 : index
    %c1 = arith.constant 1 : index
    %9 = vector.load %arg1[%c0_3, %c1] : memref<4x4xf32, #tpu.memory_space<vmem>>, vector<4x1xf32>
    %10 = vector.extract_strided_slice %0 {offsets = [1, 0], sizes = [1, 128], strides = [1, 1]} : vector<5x128xf32> to vector<1x128xf32>
    %11 = vector.broadcast %9 : vector<4x1xf32> to vector<4x128xf32>
    %12 = vector.broadcast %10 : vector<1x128xf32> to vector<4x128xf32>
    %13 = arith.mulf %11, %12 : vector<4x128xf32>
    %14 = arith.addf %8, %13 : vector<4x128xf32>
    %c0_4 = arith.constant 0 : index
    %c2 = arith.constant 2 : index
    %15 = vector.load %arg1[%c0_4, %c2] : memref<4x4xf32, #tpu.memory_space<vmem>>, vector<4x1xf32>
    %16 = vector.extract_strided_slice %0 {offsets = [2, 0], sizes = [1, 128], strides = [1, 1]} : vector<5x128xf32> to vector<1x128xf32>
    %17 = vector.broadcast %15 : vector<4x1xf32> to vector<4x128xf32>
    %18 = vector.broadcast %16 : vector<1x128xf32> to vector<4x128xf32>
    %19 = arith.mulf %17, %18 : vector<4x128xf32>
    %20 = arith.addf %14, %19 : vector<4x128xf32>
    %c0_5 = arith.constant 0 : index
    %c3 = arith.constant 3 : index
    %21 = vector.load %arg1[%c0_5, %c3] : memref<4x4xf32, #tpu.memory_space<vmem>>, vector<4x1xf32>
    %22 = vector.extract_strided_slice %0 {offsets = [3, 0], sizes = [1, 128], strides = [1, 1]} : vector<5x128xf32> to vector<1x128xf32>
    %23 = vector.broadcast %21 : vector<4x1xf32> to vector<4x128xf32>
    %24 = vector.broadcast %22 : vector<1x128xf32> to vector<4x128xf32>
    %25 = arith.mulf %23, %24 : vector<4x128xf32>
    %26 = arith.addf %20, %25 : vector<4x128xf32>
    %c0_6 = arith.constant 0 : index
    %c0_7 = arith.constant 0 : index
    %27 = vector.load %arg2[%c0_6, %c0_7] : memref<4x128xf32, #tpu.memory_space<vmem>>, vector<4x128xf32>
    %28 = math.sin %26 : vector<4x128xf32>
    %29 = arith.addf %27, %28 : vector<4x128xf32>
    %c0_8 = arith.constant 0 : index
    %c0_9 = arith.constant 0 : index
    %30 = vector.load %arg4[%c0_8, %c0_9] : memref<4x128xf32, #tpu.memory_space<vmem>>, vector<4x128xf32>
    tpu.vector_store %arg4[%c0_8, %c0_9], %29 {strides = array<i32>} : memref<4x128xf32, #tpu.memory_space<vmem>>, vector<4x128xf32>,
    return
  }
  func.func @transform_0(%arg0: i32) -> (i32, i32) {
    %c0_i32 = arith.constant 0 : i32
    %c0_i32_0 = arith.constant 0 : i32
    return %arg0, %c0_i32 : i32, i32
  }
  func.func @transform_1(%arg0: i32) -> (i32, i32) {
    %c0_i32 = arith.constant 0 : i32
    %c0_i32_0 = arith.constant 0 : i32
    return %arg0, %c0_i32 : i32, i32
  }
  func.func @transform_2(%arg0: i32) -> (i32, i32) {
    %c0_i32 = arith.constant 0 : i32
    %c0_i32_0 = arith.constant 0 : i32
    %c0_i32_1 = arith.constant 0 : i32
    return %c0_i32, %c0_i32_0 : i32, i32
  }
  func.func @transform_3(%arg0: i32) -> (i32, i32) {
    %c0_i32 = arith.constant 0 : i32
    %c0_i32_0 = arith.constant 0 : i32
    return %arg0, %c0_i32 : i32, i32
  }
}

</mosaic_0001>

<bundles_post_ra>
// kernel: mul.15
= control target key start
LH: loop header
LB: loop body
LE: loop exit
PB: predicated region body
PF: predicated region fallthrough
CT: control target
= control target key end

     0   :  { %s131_s10 = smov 30   ;;  %s132_s11 = smov 26   ;;  %vm3_vm0 = vcmask 15360   ;;  %vm9_vm1 = vcmask 261360   ;;  %vm15_vm2 = vcmask 244960   ;;  %vm21_vm3 = vcmask 228560   ;;  %s207_s0 = inlined_call_operand.vmem [shape: f32[16,2], index: 0, kind: input, shape index: {}]   ;;  %s208_s1 = inlined_call_operand.vmem [shape: f32[32], index: 1, kind: output, shape index: {}]  }
   0x1   :  { %v101_v0 = vld [vmem:[%s207_s0 + $0xf] sm:$0x1]   ;;  %v103_v1 = vld [vmem:[%s207_s0 + $0xd] sm:$0x1]   ;;  %v102_v2 = vld [vmem:[%s207_s0 + $0xe] sm:$0x1]  }
   0x2   :  { %7 = vrot.lane.b32.xlu0 %v101_v0, %s131_s10  ;;  %19 = vrot.lane.b32.xlu1 %v103_v1, %s132_s11  ;;  %v104_v3 = vld [vmem:[%s207_s0 + $0xc] sm:$0x1]   ;;  %s133_s16 = smov 28   ;;  %s134_s17 = smov 24   ;;  %v105_v4 = vld [vmem:[%s207_s0 + $0xb] sm:$0x1]  }
   0x3   :  { %v106_v5 = vld [vmem:[%s207_s0 + $0xa] sm:$0x1]   ;;  %v2_v6 = vld [vmem:[%s207_s0] sm:$0x1]   ;;  %s135_s24 = smov 22   ;;  %s136_s25 = smov 20  }
   0x4   :  { %4 = vst.msk [vmem:[#allocation0] sm:$0x1] %vm3_vm0, %v2_v6   ;;  %v107_v7 = vld [vmem:[%s207_s0 + $0x9] sm:$0x1]   ;;  %v108_v8 = vld [vmem:[%s207_s0 + $0x8] sm:$0x1]  }
   0x5   :  { %s137_s30 = smov 18   ;;  %s138_s2 = smov 16   ;;  %v109_v9 = vld [vmem:[%s207_s0 + $0x7] sm:$0x1]   ;;  %v110_v10 = vld [vmem:[%s207_s0 + $0x6] sm:$0x1]  }
   0x6   :  { %13 = vrot.lane.b32.xlu0 %v102_v2, %s133_s16  ;;  %25 = vrot.lane.b32.xlu1 %v104_v3, %s134_s17  ;;  %s139_s7 = smov 14   ;;  %s140_s8 = smov 12   ;;  %v111_v11 = vld [vmem:[%s207_s0 + $0x5] sm:$0x1]   ;;  %v112_v12 = vld [vmem:[%s207_s0 + $0x4] sm:$0x1]  }
   0x7   :  { %s141_s13 = smov 10   ;;  %s142_s14 = smov 8   ;;  %v113_v13 = vld [vmem:[%s207_s0 + $0x3] sm:$0x1]   ;;  %v114_v14 = vld [vmem:[%s207_s0 + $0x2] sm:$0x1]  }
   0x8   :  { %s143_s19 = smov 6   ;;  %s144_s20 = smov 4   ;;  %v115_v15 = vld [vmem:[%s207_s0 + $0x1] sm:$0x1]   ;;  %vm27_vm4 = vcmask 212160   ;;  %vm33_vm5 = vcmask 195760  }
   0x9   :  { %s145_s0 = smov 2   ;;  %vm39_vm6 = vcmask 179360   ;;  %vm45_vm7 = vcmask 162960   ;;  %vm51_vm8 = vcmask 146560   ;;  %vm57_vm9 = vcmask 130160  }
   0xa   :  { %31 = vrot.lane.b32.xlu0 %v105_v4, %s135_s24  ;;  %37 = vrot.lane.b32.xlu1 %v106_v5, %s136_s25  ;;  %vm63_vm10 = vcmask 113760   ;;  %vm69_vm11 = vcmask 97360   ;;  %vm75_vm12 = vcmask 80960   ;;  %vm81_vm13 = vcmask 64560  }
   0xb   :  { %vm87_vm14 = vcmask 48160   ;;  %vm93_vm15 = vcmask 31760  }
   0xe   :  { %43 = vrot.lane.b32.xlu0 %v107_v7, %s137_s30  ;;  %49 = vrot.lane.b32.xlu1 %v108_v8, %s138_s2 }
  0x12   :  { %55 = vrot.lane.b32.xlu0 %v109_v9, %s139_s7  ;;  %61 = vrot.lane.b32.xlu1 %v110_v10, %s140_s8 }
  0x16   :  { %67 = vrot.lane.b32.xlu0 %v111_v11, %s141_s13  ;;  %73 = vrot.lane.b32.xlu1 %v112_v12, %s142_s14 }
  0x1a   :  { %79 = vrot.lane.b32.xlu0 %v113_v13, %s143_s19  ;;  %85 = vrot.lane.b32.xlu1 %v114_v14, %s144_s20 }
  0x1e   :  { %91 = vrot.lane.b32.xlu0 %v115_v15, %s145_s0 }
  0x74   :  { %v8_v16 = vpop.permute.xlu0 %7   ;;  %v20_v17 = vpop.permute.xlu1 %19  }
  0x75   :  { %10 = vst.msk [vmem:[#allocation0] sm:$0x1] %vm9_vm1, %v8_v16  }
  0x78   :  { %v14_v18 = vpop.permute.xlu0 %13   ;;  %v26_v19 = vpop.permute.xlu1 %25  }
  0x79   :  { %16 = vst.msk [vmem:[#allocation0] sm:$0x1] %vm15_vm2, %v14_v18  }
  0x7a   :  { %22 = vst.msk [vmem:[#allocation0] sm:$0x1] %vm21_vm3, %v20_v17  }
  0x7b   :  { %28 = vst.msk [vmem:[#allocation0] sm:$0x1] %vm27_vm4, %v26_v19  }
  0x7c   :  { %v32_v20 = vpop.permute.xlu0 %31   ;;  %v38_v21 = vpop.permute.xlu1 %37  }
  0x7d   :  { %34 = vst.msk [vmem:[#allocation0] sm:$0x1] %vm33_vm5, %v32_v20  }
  0x7e   :  { %40 = vst.msk [vmem:[#allocation0] sm:$0x1] %vm39_vm6, %v38_v21  }
  0x80   :  { %v44_v22 = vpop.permute.xlu0 %43   ;;  %v50_v23 = vpop.permute.xlu1 %49  }
  0x81   :  { %46 = vst.msk [vmem:[#allocation0] sm:$0x1] %vm45_vm7, %v44_v22  }
  0x82   :  { %52 = vst.msk [vmem:[#allocation0] sm:$0x1] %vm51_vm8, %v50_v23  }
  0x84   :  { %v56_v24 = vpop.permute.xlu0 %55   ;;  %v62_v25 = vpop.permute.xlu1 %61  }
  0x85   :  { %58 = vst.msk [vmem:[#allocation0] sm:$0x1] %vm57_vm9, %v56_v24  }
  0x86   :  { %64 = vst.msk [vmem:[#allocation0] sm:$0x1] %vm63_vm10, %v62_v25  }
  0x88   :  { %v68_v26 = vpop.permute.xlu0 %67   ;;  %v74_v27 = vpop.permute.xlu1 %73  }
  0x89   :  { %70 = vst.msk [vmem:[#allocation0] sm:$0x1] %vm69_vm11, %v68_v26  }
  0x8a   :  { %76 = vst.msk [vmem:[#allocation0] sm:$0x1] %vm75_vm12, %v74_v27  }
  0x8c   :  { %v80_v28 = vpop.permute.xlu0 %79   ;;  %v86_v29 = vpop.permute.xlu1 %85  }
  0x8d   :  { %82 = vst.msk [vmem:[#allocation0] sm:$0x1] %vm81_vm13, %v80_v28  }
  0x8e   :  { %88 = vst.msk [vmem:[#allocation0] sm:$0x1] %vm87_vm14, %v86_v29  }
  0x90   :  { %v92_v30 = vpop.permute.xlu0 %91  }
  0x91   :  { %94 = vst.msk [vmem:[#allocation0] sm:$0x1] %vm93_vm15, %v92_v30  }
  0x98   :  { %v98_v31 = vld [vmem:[#allocation0] sm:$0x1] }
  0x99   :  { %100 = vst [vmem:[%s208_s1] sm:$0x1] %v98_v31 }

// kernel: tile.10
= control target key start
LH: loop header
LB: loop body
LE: loop exit
PB: predicated region body
PF: predicated region fallthrough
CT: control target
= control target key end

     0   :  { %s28_s0 = inlined_call_operand.vmem [shape: f32[2], index: 0, kind: input, shape index: {}]   ;;  %s29_s1 = inlined_call_operand.vmem [shape: f32[16,2], index: 1, kind: output, shape index: {}]  }
   0x1   :  { %v4_v0 = vld [vmem:[%s28_s0] ss:$0 sm:$0xff] }
   0x2   :  { %5 = vst [vmem:[%s29_s1] sm:$0xff] %v4_v0  ;;  %8 = vst [vmem:[%s29_s1 + $0x8] sm:$0xff] %v4_v0 }

// kernel: tile.15
= control target key start
LH: loop header
LB: loop body
LE: loop exit
PB: predicated region body
PF: predicated region fallthrough
CT: control target
= control target key end

     0   :  { %vm7_vm0 = vcmask 261120   ;;  %s37_s8 = smov 32   ;;  %s38_s9 = smov 64   ;;  %vm13_vm1 = vcmask 1048320   ;;  %vm19_vm2 = vcmask 785920   ;;  %vm25_vm3 = vcmask 523520   ;;  %s55_s0 = inlined_call_operand.vmem [shape: f32[4,32], index: 0, kind: input, shape index: {}]   ;;  %s56_s1 = inlined_call_operand.vmem [shape: f32[1,128], index: 1, kind: output, shape index: {}]  }
   0x1   :  { %v4_v0 = vld [vmem:[%s55_s0] sm:$0xf]  ;;  %s36_s0 = smov 96  }
   0x2   :  { %5 = vst [vmem:[#allocation1] sm:$0xf] %v4_v0 }
   0x9   :  { %v10_v1 = vld [vmem:[#allocation1 + $0x3] sm:$0x1]   ;;  %v22_v2 = vld [vmem:[#allocation1 + $0x1] sm:$0x1]   ;;  %v6_v3 = vld [vmem:[#allocation1] sm:$0x1]  }
   0xa   :  { %11 = vrot.lane.b32.xlu0 %v10_v1, %s36_s0  ;;  %23 = vrot.lane.b32.xlu1 %v22_v2, %s37_s8  ;;  %v16_v4 = vld [vmem:[#allocation1 + $0x2] sm:$0x1]   ;;  %8 = vst.msk [vmem:[#allocation0] sm:$0x1] %vm7_vm0, %v6_v3  }
   0xe   :  { %17 = vrot.lane.b32.xlu0 %v16_v4, %s38_s9 }
  0x7c   :  { %v12_v5 = vpop.permute.xlu0 %11   ;;  %v24_v6 = vpop.permute.xlu1 %23  }
  0x7d   :  { %14 = vst.msk [vmem:[#allocation0] sm:$0x1] %vm13_vm1, %v12_v5  }
  0x80   :  { %v18_v7 = vpop.permute.xlu0 %17  }
  0x81   :  { %20 = vst.msk [vmem:[#allocation0] sm:$0x1] %vm19_vm2, %v18_v7  }
  0x82   :  { %26 = vst.msk [vmem:[#allocation0] sm:$0x1] %vm25_vm3, %v24_v6  }
  0x89   :  { %v30_v8 = vld [vmem:[#allocation0] sm:$0x1] }
  0x8a   :  { %32 = vst [vmem:[%s56_s1] sm:$0x1] %v30_v8 }

// kernel: positional_encoding.1
= control target key start
LH: loop header
LB: loop body
LE: loop exit
PB: predicated region body
PF: predicated region fallthrough
CT: control target
= control target key end

     0   :  { %v199_v0 = vmov 0   ;;  %v200_v2 = vmov 2   ;;  %v201_v3 = vmov 1   ;;  %v202_v4 = vmov 3   ;;  %s262_s0 = inlined_call_operand.vmem [shape: f32[4,4], index: 0, kind: input, shape index: {}]   ;;  %s263_s2 = inlined_call_operand.vmem [shape: f32[5,128], index: 2, kind: input, shape index: {}]   ;;  %s264_s1 = inlined_call_operand.vmem [shape: f32[4,128], index: 1, kind: input, shape index: {}]   ;;  %s265_s3 = inlined_call_operand.vmem [shape: f32[4,128], index: 3, kind: output, shape index: {}]  }
   0x1   :  { %190 = vset.pattern.permute.xlu0 %v199_v0  ;;  %v15_v1 = vld [vmem:[%s262_s0] sm:$0xf]  ;;  %192 = vset.pattern.permute.xlu1 %v200_v2  ;;  %v21_v5 = vlaneseq  ;;  %v203_v40 = vmov 683565275   ;;  %v204_v42 = vmov 2475754826  }
   0x2   :  { %18 = vperm.xlu0 %190, %v15_v1   ;;  %42 = vperm.xlu1 %192, %v15_v1   ;;  %v14_v8 = vld [vmem:[%s263_s2] sm:$0x1f]  ;;  %v205_v45 = vmov 2131351028   ;;  %v206_v48 = vmov 2102212464  }
   0x3   :  { %v22_v6 = vshrl.u32 %v21_v5, 7  ;;  %v207_v51 = vmov 920167782   ;;  %v208_v54 = vmov 1326507024  }
   0x5   :  { %v23_v7 = vsub.s32 0, %v22_v6  ;;  %v28_v10 = vsub.s32 4, %v22_v6  ;;  %v37_v11 = vsub.s32 1, %v22_v6  ;;  %v47_v13 = vsub.s32 2, %v22_v6 }
   0x6   :  { %191 = vset.pattern.permute.xlu0 %v201_v3  ;;  %193 = vset.pattern.permute.xlu1 %v202_v4  ;;  %v57_v15 = vsub.s32 3, %v22_v6 }
   0x7   :  { %32 = vperm.xlu0 %191, %v15_v1   ;;  %52 = vperm.xlu1 %193, %v15_v1   ;;  %v24_v9 = vrot.slane %v14_v8, %v23_v7  ;;  %v29_v16 = vrot.slane %v14_v8, %v28_v10  ;;  %v38_v18 = vrot.slane %v14_v8, %v37_v11 }
   0x8   :  { %v48_v19 = vrot.slane %v14_v8, %v47_v13  ;;  %v58_v20 = vrot.slane %v14_v8, %v57_v15 }
   0xb   :  { %194 = vset.pattern.permute.xlu0 %v202_v4 }
  0x81   :  { %v19_v12 = vpop.permute.xlu0 %18  ;;  %v43_v14 = vpop.permute.xlu1 %42 }
  0x82   :  { %v25_v17 = vmul.f32 %v24_v9, %v19_v12  ;;  %v49_v25 = vmul.f32 %v48_v19, %v43_v14 }
  0x84   :  { %v30_v23 = vadd.f32 %v29_v16, %v25_v17 }
  0x86   :  { %v33_v21 = vpop.permute.xlu0 %32  ;;  %v53_v22 = vpop.permute.xlu1 %52 }
  0x87   :  { %v39_v24 = vmul.f32 %v38_v18, %v33_v21  ;;  %v59_v27 = vmul.f32 %v58_v20, %v53_v22 }
  0x89   :  { %v40_v26 = vadd.f32 %v39_v24, %v30_v23 }
  0x8b   :  { %v50_v28 = vadd.f32 %v49_v25, %v40_v26 }
  0x8d   :  { %v235_v29 = vadd.f32 %v59_v27, %v50_v28 }
  0x8f   :  { %v65_v30 = vand.u32 2139095040, %v235_v29  ;;  %v62_v34 = vand.u32 2147483647, %v235_v29  ;;  %vm64_vm7 = vcmp.lt.s32.totalorder %v235_v29, 0  ;;  %vm154_vm12 = vweird.f32 %v235_v29 }
  0x91   :  { %v66_v31 = vshrl.u32 %v65_v30, 23  ;;  %v69_v37 = vand.u32 8388607, %v62_v34  ;;  %vm63_vm8 = vcmp.le.f32.partialorder %v62_v34, 0.7853982 }
  0x92   :  { %v61_v34 = vld [vmem:[%s264_s1] sm:$0xf] }
  0x93   :  { %v172_v32 = vadd.s32 4294967169, %v66_v31  ;;  %v70_v56 = vor.u32 8388608, %v69_v37 }
  0x95   :  { %v72_v33 = vadd.s32 1, %v172_v32  ;;  %v110_v6 = vshll.u32 %v70_v56, 8 }
  0x97   :  { %vm73_vm0 = vcmp.gt.s32.totalorder %v72_v33, 0 }
  0x98   :  { %v74_v35 = vsel %vm73_vm0, %v72_v33, 0 }
  0x99   :  { %v76_v36 = vand.u32 31, %v74_v35  ;;  %v75_v39 = vshrl.u32 %v74_v35, 5 }
  0x9b   :  { %v77_v38 = vsub.s32 32, %v76_v36  ;;  %v79_v41 = vshll.u32 %v203_v40, %v76_v36  ;;  %v82_v43 = vshll.u32 %v204_v42, %v76_v36  ;;  %v85_v47 = vshll.u32 %v205_v45, %v76_v36 }
  0x9c   :  { %v88_v50 = vshll.u32 %v206_v48, %v76_v36  ;;  %v91_v53 = vshll.u32 %v207_v51, %v76_v36  ;;  %vm94_vm1 = vcmp.lt.s32.totalorder %v75_v39, 1  ;;  %vm97_vm2 = vcmp.lt.s32.totalorder %v75_v39, 4 }
  0x9d   :  { %v80_v44 = vshrl.u32 %v204_v42, %v77_v38  ;;  %v83_v46 = vshrl.u32 %v205_v45, %v77_v38  ;;  %v86_v49 = vshrl.u32 %v206_v48, %v77_v38  ;;  %v89_v52 = vshrl.u32 %v207_v51, %v77_v38 }
  0x9e   :  { %v92_v55 = vshrl.u32 %v208_v54, %v77_v38  ;;  %v78_v1 = vshrl.u32 %v203_v40, %v77_v38  ;;  %vm96_vm3 = vcmp.lt.s32.totalorder %v75_v39, 3  ;;  %vm95_vm4 = vcmp.lt.s32.totalorder %v75_v39, 2 }
  0x9f   :  { %v81_v57 = vor.u32 %v80_v44, %v79_v41  ;;  %v84_v58 = vor.u32 %v83_v46, %v82_v43  ;;  %v87_v59 = vor.u32 %v86_v49, %v85_v47  ;;  %v90_v60 = vor.u32 %v89_v52, %v88_v50 }
  0xa0   :  { %v93_v61 = vor.u32 %v92_v55, %v91_v53 }
  0xa1   :  { %v99_v62 = vsel %vm97_vm2, %v87_v59, 2102212464  ;;  %v102_v63 = vsel %vm94_vm1, %v81_v57, %v84_v58  ;;  %v106_v0 = vsel %vm94_vm1, %v84_v58, %v87_v59  ;;  %v103_v2 = vsel %vm97_vm2, %v90_v60, 920167782 }
  0xa2   :  { %v107_v3 = vsel %vm97_vm2, %v93_v61, 1326507024  ;;  %v104_v4 = vsel %vm96_vm3, %v87_v59, %v103_v2  ;;  %v98_v7 = vsel %vm94_vm1, %v78_v1, %v81_v57  ;;  %v100_v8 = vsel %vm96_vm3, %v84_v58, %v99_v62 }
  0xa3   :  { %v108_v5 = vsel %vm96_vm3, %v90_v60, %v107_v3  ;;  %v105_v9 = vsel %vm95_vm4, %v102_v63, %v104_v4  ;;  %v101_v15 = vsel %vm95_vm4, %v98_v7, %v100_v8 }
  0xa4   :  { %v109_v10 = vsel %vm95_vm4, %v106_v0, %v108_v5  ;;  %v244_v13 = vmul.u32.u64.low %v110_v6, %v105_v9  ;;  %v245_v14 = vmul.u32.u64.high %v110_v6, %v105_v9, %v244_v13  ;;  %v117_v17 = vmul.u32 %v110_v6, %v101_v15 }
  0xa5   :  { %v241_v11 = vmul.u32.u64.low %v110_v6, %v109_v10  ;;  %v242_v12 = vmul.u32.u64.high %v110_v6, %v109_v10, %v241_v11 }
  0xa6   :  { %v120_v16 = vadd.s32 1, %v245_v14 }
  0xa7   :  { %vm119_vm5 = vc.u32 %v242_v12, %v244_v13  ;;  %v118_v30 = vadd.s32 %v244_v13, %v242_v12 }
  0xa8   :  { %v121_v18 = vsel %vm119_vm5, %v120_v16, %v245_v14 }
  0xa9   :  { %v122_v19 = vadd.s32 %v121_v18, %v117_v17 }
  0xab   :  { %v123_v20 = vadd.s32 536870912, %v122_v19 }
  0xad   :  { %v124_v21 = vshrl.u32 %v123_v20, 30 }
  0xaf   :  { %v125_v22 = vshll.u32 %v124_v21, 30  ;;  %v148_v43 = vsub.s32 4, %v124_v21 }
  0xb1   :  { %v126_v23 = vsub.s32 %v122_v19, %v125_v22  ;;  %v149_v46 = vsel %vm64_vm7, %v148_v43, %v124_v21 }
  0xb2   :  { %v151_v48 = vsel %vm63_vm8, 0, %v149_v46 }
  0xb3   :  { %v128_v24 = vsub.s32 0, %v126_v23  ;;  %v155_v49 = vadd.s32 3, %v151_v48 }
  0xb5   :  { %v173_v25 = vmin.u32 %v128_v24, %v126_v23  ;;  %v156_v50 = vand.u32 3, %v155_v49 }
  0xb7   :  { %v130_v26 = vclz %v173_v25  ;;  %vm161_vm9 = vcmp.eq.s32.totalorder %v156_v50, 2  ;;  %vm158_vm10 = vcmp.eq.s32.totalorder %v156_v50, 0  ;;  %vm157_vm11 = vcmp.lt.s32.totalorder %v156_v50, 2 }
  0xb9   :  { %v174_v27 = vadd.s32 4294967294, %v130_v26 }
  0xbb   :  { %vm175_vm6 = vcmp.lt.s32.totalorder %v174_v27, 0 }
  0xbc   :  { %v133_v28 = vsel %vm175_vm6, 0, %v174_v27 }
  0xbd   :  { %v134_v31 = vsub.s32 32, %v133_v28  ;;  %v138_v32 = vsub.s32 4294967266, %v133_v28  ;;  %v135_v33 = vshll.u32 %v126_v23, %v133_v28 }
  0xbf   :  { %v136_v35 = vshrl.u32 %v118_v30, %v134_v31  ;;  %v139_v36 = vadd.s32 127, %v138_v32 }
  0xc1   :  { %v137_v37 = vor.u32 %v136_v35, %v135_v33  ;;  %v140_v38 = vshll.u32 %v139_v36, 23 }
  0xc3   :  { %v141_v39 = vor.u32 4788187, %v140_v38  ;;  %v144_v41 = vcvt.s32.f32 %v137_v37 }
  0xc5   :  { %v142_v40 = vand.u32 2147483647, %v141_v39 }
  0xc7   :  { %v145_v42 = vmul.f32 %v144_v41, %v142_v40 }
  0xc9   :  { %v146_v44 = vxor.u32 2147483648, %v145_v42 }
  0xcb   :  { %v147_v45 = vsel %vm64_vm7, %v146_v44, %v145_v42 }
  0xcc   :  { %v150_v47 = vsel %vm63_vm8, %v235_v29, %v147_v45 }
  0xcd   :  { %195 = vcosq.f32 %v150_v47 }
  0xce   :  { %197 = vsinq.f32 %v150_v47 }
  0xd7   :  { %v196_v51 = vpop.eup %195 }
  0xd8   :  { %v198_v52 = vpop.eup %197  ;;  %v162_v53 = vxor.u32 2147483648, %v196_v51 }
  0xd9   :  { %v159_v54 = vxor.u32 2147483648, %v198_v52 }
  0xda   :  { %v163_v55 = vsel %vm161_vm9, %v162_v53, %v198_v52 }
  0xdb   :  { %v160_v56 = vsel %vm158_vm10, %v196_v51, %v159_v54 }
  0xdc   :  { %v164_v57 = vsel %vm157_vm11, %v160_v56, %v163_v55 }
  0xdd   :  { %v165_v58 = vsel %vm154_vm12, nan, %v164_v57 }
  0xde   :  { %v166_v59 = vadd.f32 %v165_v58, %v61_v34 }
  0xe0   :  { %167 = vst [vmem:[%s265_s3] sm:$0xf] %v166_v59 }

</bundles_post_ra>
